<compile_context>
chip_gen: v5e
topology: v5e:2x2
jax: 0.10.0
libtpu: 0.0.40
codegen_flags: <defaults>
</compile_context>

<pallas_src>
import functools

import jax
import jax.numpy as jnp
from jax import lax
from jax.experimental import pallas as pl
from jax.experimental.pallas import tpu as pltpu

_LANES = 128
_VMEM_LIMIT = 32 * 1024 * 1024      # scoped-VMEM request (fits v5e/v6e/v7x)
_BLOCK_BUDGET = 10 * 1024 * 1024    # modeled resident bytes per grid step


def _round_up(x, m):
    return ((x + m - 1) // m) * m


def _sublane(dtype):
    # Minimum sublane multiple for the second-to-last block dim, by itemsize.
    return max(8, 32 // jnp.dtype(dtype).itemsize)


# --------------------------------------------------------------------------
# Small-C kernel: batch on lanes, classes on sublanes.
# --------------------------------------------------------------------------
def _ece_small_c_kernel(bounds_ref, logits_ref, target_ref, out_ref, *,
                        block_cols, num_valid):
    # bounds_ref: (nbp, 2) f32, [:,0]=lowers, [:,1]=uppers (VMEM resident)
    # logits_ref: (C, bt) input dtype;  target_ref: (1, bt) int32
    # out_ref:    (1, nbp, 128) f32, lanes 0/1/2 = counts/conf_sums/acc_sums
    logits = logits_ref[...].astype(jnp.float32)                 # (C, bt)
    c = logits.shape[0]
    nbp = bounds_ref.shape[0]

    col_max = jnp.max(logits, axis=0, keepdims=True)             # (1, bt)
    denom = jnp.sum(jnp.exp(logits - col_max), axis=0, keepdims=True)
    conf = 1.0 / denom                                           # max softmax prob

    cls = lax.broadcasted_iota(jnp.int32, logits.shape, 0)
    pred = jnp.min(jnp.where(logits == col_max, cls, jnp.int32(c)),
                   axis=0, keepdims=True)                        # first argmax
    acc = (pred == target_ref[...]).astype(jnp.float32)          # (1, bt)

    if num_valid is not None:        # only built when the batch was padded
        col0 = pl.program_id(0) * block_cols
        col_idx = col0 + lax.broadcasted_iota(jnp.int32, (1, block_cols), 1)
        conf = jnp.where(col_idx < num_valid, conf, 0.0)         # 0 -> no bin

    bounds = bounds_ref[...]
    lowers = bounds[:, 0:1]                                      # (nbp, 1)
    uppers = bounds[:, 1:2]
    in_bin = jnp.logical_and(conf > lowers, conf <= uppers).astype(jnp.float32)

    counts = jnp.sum(in_bin, axis=1, keepdims=True)              # (nbp, 1)
    conf_sums = jnp.sum(in_bin * conf, axis=1, keepdims=True)
    acc_sums = jnp.sum(in_bin * acc, axis=1, keepdims=True)

    # Pack the three stat columns into a lane-dense (nbp, 128) block.
    lane = lax.broadcasted_iota(jnp.int32, (nbp, _LANES), 1)
    packed = jnp.where(lane == 0, counts,
             jnp.where(lane == 1, conf_sums,
             jnp.where(lane == 2, acc_sums, 0.0)))
    out_ref[...] = packed.reshape(1, nbp, _LANES)


def _ece_small_c(logits, target, n_bins):
    B, C = logits.shape
    itemsize = jnp.dtype(logits.dtype).itemsize
    nbp = _round_up(n_bins, 8)

    # VMEM footprint per batch column (classes sublane-padded):
    c_sub = _round_up(C, _sublane(logits.dtype))
    per_col = (2 * c_sub * itemsize          # logits block, double buffered
               + 4 * c_sub * 4               # f32 temporaries (cast/x-max/exp/iota)
               + 2 * 8 * 4                   # (1,bt) int32 target, double buffered
               + 4 * nbp * 4                 # (nbp,bt) bin temporaries
               + 16 * 8 * 4)                 # assorted (1,bt) working rows
    bt = max(_LANES, (_BLOCK_BUDGET // per_col) // _LANES * _LANES)
    b_cap = _round_up(B, _LANES)
    bt = min(bt, b_cap)
    if bt == b_cap and b_cap >= 2 * _LANES:
        # Guarantee grid >= 2 so v7x can shard the 'parallel' axis over 2 TCs.
        bt = max(_LANES, (b_cap // 2 // _LANES) * _LANES)
    b_pad = _round_up(B, bt)
    grid = b_pad // bt

    logits_t = jnp.transpose(logits)                       # (C, B), batch on lanes
    if b_pad != B:
        logits_t = jnp.pad(logits_t, ((0, 0), (0, b_pad - B)))
        target = jnp.pad(target, ((0, b_pad - B),))
    target_row = target.astype(jnp.int32).reshape(1, b_pad)

    bounds = jnp.linspace(0.0, 1.0, n_bins + 1, dtype=jnp.float32)
    lowers = jnp.full((nbp,), 2.0, jnp.float32).at[:n_bins].set(bounds[:-1])
    uppers = jnp.full((nbp,), 2.0, jnp.float32).at[:n_bins].set(bounds[1:])
    bounds2 = jnp.stack([lowers, uppers], axis=1)          # (nbp, 2)

    kernel = functools.partial(_ece_small_c_kernel, block_cols=bt,
                               num_valid=(B if b_pad != B else None))

    partials = pl.pallas_call(
        kernel,
        out_shape=jax.ShapeDtypeStruct((grid, nbp, _LANES), jnp.float32),
        grid=(grid,),
        in_specs=[
            pl.BlockSpec((nbp, 2), lambda i: (0, 0)),      # bin bounds (resident)
            pl.BlockSpec((C, bt), lambda i: (0, i)),       # logits tile (lane-dense)
            pl.BlockSpec((1, bt), lambda i: (0, i)),       # targets (lane-dense)
        ],
        out_specs=pl.BlockSpec((1, nbp, _LANES), lambda i: (i, 0, 0)),
        compiler_params=pltpu.CompilerParams(
            dimension_semantics=("parallel",),
            vmem_limit_bytes=_VMEM_LIMIT),
    )(bounds2, logits_t, target_row)

    stats = jnp.sum(partials, axis=0)                      # (nbp, 128)
    return stats[:n_bins, 0], stats[:n_bins, 1], stats[:n_bins, 2]


# --------------------------------------------------------------------------
# Large-C kernel: row-major (already lane-dense, HBM-bound regime).
# --------------------------------------------------------------------------
def _ece_large_c_kernel(bounds_ref, logits_ref, target_ref, out_ref, *,
                        block_rows, num_valid):
    # bounds_ref: (2, 128) f32, row 0 = lowers, row 1 = uppers (VMEM resident)
    # logits_ref: (bt, C);  target_ref: (bt, 1) int32
    # out_ref:    (1, 3, 128) f32 rows = counts / conf_sums / acc_sums
    logits = logits_ref[...].astype(jnp.float32)
    c = logits.shape[1]

    row_max = jnp.max(logits, axis=1, keepdims=True)              # (bt, 1)
    denom = jnp.sum(jnp.exp(logits - row_max), axis=1, keepdims=True)
    conf = 1.0 / denom

    cls = lax.broadcasted_iota(jnp.int32, logits.shape, 1)
    pred = jnp.min(jnp.where(logits == row_max, cls, jnp.int32(c)),
                   axis=1, keepdims=True)                         # first argmax
    acc = (pred == target_ref[...]).astype(jnp.float32)           # (bt, 1)

    if num_valid is not None:
        row0 = pl.program_id(0) * block_rows
        row_idx = row0 + lax.broadcasted_iota(jnp.int32, (block_rows, 1), 0)
        conf = jnp.where(row_idx < num_valid, conf, 0.0)

    bounds = bounds_ref[...]
    lowers = bounds[0:1, :]                                       # (1, 128)
    uppers = bounds[1:2, :]
    in_bin = jnp.logical_and(conf > lowers, conf <= uppers).astype(jnp.float32)

    counts = jnp.sum(in_bin, axis=0, keepdims=True)               # (1, 128)
    conf_sums = jnp.sum(in_bin * conf, axis=0, keepdims=True)
    acc_sums = jnp.sum(in_bin * acc, axis=0, keepdims=True)
    stats = jnp.concatenate([counts, conf_sums, acc_sums], axis=0)  # (3, 128)
    out_ref[...] = stats.reshape(1, 3, _LANES)


def _ece_large_c(logits, target, n_bins):
    B, C = logits.shape
    assert n_bins <= _LANES
    itemsize = jnp.dtype(logits.dtype).itemsize
    sub = _sublane(logits.dtype)

    # VMEM footprint per batch row (classes lane-padded to 128):
    c_lanes = _round_up(C, _LANES)
    per_row = (2 * c_lanes * itemsize        # logits block, double buffered
               + 4 * c_lanes * 4             # f32 temporaries
               + 2 * _LANES * 4              # (bt,1) int32 target (lane padded), x2
               + 4 * _LANES * 4              # (bt,128) bin temporaries
               + 8 * _LANES * 4)             # assorted (bt,1) working columns
    bt = max(sub, (_BLOCK_BUDGET // per_row) // sub * sub)
    b_cap = _round_up(B, sub)
    bt = min(bt, b_cap)
    if bt == b_cap and b_cap >= 2 * sub:
        bt = max(sub, (b_cap // 2 // sub) * sub)   # grid >= 2 for v7x megacore
    b_pad = _round_up(B, bt)
    grid = b_pad // bt

    if b_pad != B:
        logits = jnp.pad(logits, ((0, b_pad - B), (0, 0)))
        target = jnp.pad(target, ((0, b_pad - B),))
    target_col = target.astype(jnp.int32).reshape(b_pad, 1)

    bounds = jnp.linspace(0.0, 1.0, n_bins + 1, dtype=jnp.float32)
    lowers = jnp.full((_LANES,), 2.0, jnp.float32).at[:n_bins].set(bounds[:-1])
    uppers = jnp.full((_LANES,), 2.0, jnp.float32).at[:n_bins].set(bounds[1:])
    bounds2 = jnp.stack([lowers, uppers], axis=0)            # (2, 128)

    kernel = functools.partial(_ece_large_c_kernel, block_rows=bt,
                               num_valid=(B if b_pad != B else None))

    partials = pl.pallas_call(
        kernel,
        out_shape=jax.ShapeDtypeStruct((grid, 3, _LANES), jnp.float32),
        grid=(grid,),
        in_specs=[
            pl.BlockSpec((2, _LANES), lambda i: (0, 0)),     # bin bounds (resident)
            pl.BlockSpec((bt, C), lambda i: (i, 0)),         # logits tile
            pl.BlockSpec((bt, 1), lambda i: (i, 0)),         # targets
        ],
        out_specs=pl.BlockSpec((1, 3, _LANES), lambda i: (i, 0, 0)),
        compiler_params=pltpu.CompilerParams(
            dimension_semantics=("parallel",),
            vmem_limit_bytes=_VMEM_LIMIT),
    )(bounds2, logits, target_col)

    stats = jnp.sum(partials, axis=0)                        # (3, 128)
    return stats[0, :n_bins], stats[1, :n_bins], stats[2, :n_bins]


# --------------------------------------------------------------------------
# Public entry point.
# --------------------------------------------------------------------------
@functools.partial(jax.jit, static_argnames=("n_bins",))
def ece_loss(logits, target, n_bins=15):
    B, C = logits.shape
    if C < _LANES:
        counts, conf_sums, acc_sums = _ece_small_c(logits, target, n_bins)
    else:
        counts, conf_sums, acc_sums = _ece_large_c(logits, target, n_bins)

    # Every sample has 0 < conf <= 1 -> it lands in exactly one (lower, upper]
    # bin, so the batch means are recovered from the bin sums.
    nonempty = counts > 0
    safe = jnp.maximum(counts, 1.0)
    avg_conf = conf_sums / safe
    avg_acc = acc_sums / safe
    prop = counts / B
    # NOTE: torch forward has no abs() here; we mirror the code.
    ece = jnp.sum(jnp.where(nonempty, (avg_conf - avg_acc) * prop, 0.0))
    conf_mean = jnp.sum(conf_sums) / B
    acc_mean = jnp.sum(acc_sums) / B
    return ece.reshape(1), conf_mean, acc_mean


def _ref_ece(logits, target, n_bins=15):
    """Pure-JAX mirror of the PyTorch ECELoss.forward (no Pallas)."""
    logits = logits.astype(jnp.float32)
    sm = jax.nn.softmax(logits, axis=-1)
    conf = jnp.max(sm, axis=-1)
    pred = jnp.argmax(sm, axis=-1)
    acc = (pred == target).astype(jnp.float32)
    bounds = jnp.linspace(0.0, 1.0, n_bins + 1, dtype=jnp.float32)
    ece = jnp.zeros((1,), jnp.float32)
    for k in range(n_bins):
        in_f = ((conf > bounds[k]) & (conf <= bounds[k + 1])).astype(jnp.float32)
        prop = jnp.mean(in_f)
        cnt = jnp.maximum(jnp.sum(in_f), 1.0)
        acc_in = jnp.sum(acc * in_f) / cnt
        conf_in = jnp.sum(conf * in_f) / cnt
        ece = ece + jnp.where(prop > 0, (conf_in - acc_in) * prop, 0.0)
    return ece, jnp.mean(conf), jnp.mean(acc)


if __name__ == "__main__":
    key = jax.random.PRNGKey(0)

    cases = [
        # (B, C, dtype): both layouts, ragged tails, bf16 sublane rules.
        (256, 10, jnp.float32),    # small-C path, grid=2, no padding
        (300, 10, jnp.float32),    # small-C path, ragged tail
        (272, 12, jnp.bfloat16),   # small-C path, bf16 + ragged tail
        (100, 256, jnp.float32),   # row-major path, ragged tail, grid>1
        (64, 384, jnp.bfloat16),   # row-major path, bf16 sublane multiple (16)
    ]
    for idx, (B, C, dt) in enumerate(cases):
        k1, k2, key = jax.random.split(key, 3)
        logits = (2.0 * jax.random.normal(k1, (B, C), dtype=jnp.float32)).astype(dt)
        target = jax.random.randint(k2, (B,), 0, C, dtype=jnp.int32)

        out = ece_loss(logits, target)
        jax.block_until_ready(out)
        ece, conf_m, acc_m = out

        ece_r, conf_r, acc_r = _ref_ece(logits, target)
        assert jnp.allclose(ece, ece_r, rtol=1e-4, atol=1e-5), (idx, ece, ece_r)
        assert jnp.allclose(conf_m, conf_r, rtol=1e-4, atol=1e-6), (idx, conf_m, conf_r)
        assert jnp.allclose(acc_m, acc_r, rtol=1e-4, atol=1e-6), (idx, acc_m, acc_r)

    print("KERNEL_OK")
</pallas_src>

<mosaic_0001>
module attributes {stable_mosaic.version = 11 : i64} {
  func.func @_ece_small_c_kernel(%arg0: i32, %arg1: memref<16x2xf32, #tpu.memory_space<vmem>>, %arg2: memref<10x128xf32, #tpu.memory_space<vmem>>, %arg3: memref<1x128xi32, #tpu.memory_space<vmem>>, %arg4: memref<1x16x128xf32, #tpu.memory_space<vmem>>) attributes {dimension_semantics = [#tpu.dimension_semantics<parallel>], iteration_bounds = array<i64: 2>, scalar_prefetch = 0 : i64, scratch_operands = 0 : i64, tpu.core_type = #tpu.core_type<tc>, window_params = [{pipeline_mode = #tpu.pipeline_mode<synchronous>, transform_indices = @transform_0, window_bounds = array<i64: 16, 2>}, {transform_indices = @transform_1, window_bounds = array<i64: 10, 128>}, {transform_indices = @transform_2, window_bounds = array<i64: 1, 128>}, {transform_indices = @transform_3, window_bounds = array<i64: 1, 16, 128>}]} {
    %c0 = arith.constant 0 : index
    %c0_0 = arith.constant 0 : index
    %0 = vector.load %arg2[%c0, %c0_0] : memref<10x128xf32, #tpu.memory_space<vmem>>, vector<10x128xf32>
    %cst = arith.constant dense<0xFF800000> : vector<128xf32>
    %1 = vector.multi_reduction <maximumf>, %0, %cst [0] : vector<10x128xf32> to vector<128xf32>
    %2 = vector.shape_cast %1 : vector<128xf32> to vector<1x128xf32>
    %3 = vector.broadcast %2 : vector<1x128xf32> to vector<10x128xf32>
    %4 = arith.subf %0, %3 : vector<10x128xf32>
    %5 = math.exp %4 : vector<10x128xf32>
    %cst_1 = arith.constant dense<0.000000e+00> : vector<128xf32>
    %6 = vector.multi_reduction <add>, %5, %cst_1 [0] : vector<10x128xf32> to vector<128xf32>
    %7 = vector.shape_cast %6 : vector<128xf32> to vector<1x128xf32>
    %cst_2 = arith.constant 1.000000e+00 : f32
    %8 = vector.broadcast %cst_2 : f32 to vector<1x128xf32>
    %9 = arith.divf %8, %7 : vector<1x128xf32>
    %10 = tpu.iota {dimensions = array<i32: 0>} : vector<10x128xi32>
    %11 = vector.broadcast %2 : vector<1x128xf32> to vector<10x128xf32>
    %12 = arith.cmpf oeq, %0, %11 : vector<10x128xf32>
    %c10_i32 = arith.constant 10 : i32
    %13 = vector.broadcast %c10_i32 : i32 to vector<10x128xi32>
    %14 = arith.select %12, %10, %13 : vector<10x128xi1>, vector<10x128xi32>
    %cst_3 = arith.constant dense<2147483647> : vector<128xi32>
    %15 = vector.multi_reduction <minsi>, %14, %cst_3 [0] : vector<10x128xi32> to vector<128xi32>
    %16 = vector.shape_cast %15 : vector<128xi32> to vector<1x128xi32>
    %c0_4 = arith.constant 0 : index
    %c0_5 = arith.constant 0 : index
    %17 = vector.load %arg3[%c0_4, %c0_5] : memref<1x128xi32, #tpu.memory_space<vmem>>, vector<1x128xi32>
    %18 = arith.cmpi eq, %16, %17 : vector<1x128xi32>
    %19 = arith.extui %18 : vector<1x128xi1> to vector<1x128xi32>
    %20 = arith.sitofp %19 : vector<1x128xi32> to vector<1x128xf32>
    %c0_6 = arith.constant 0 : index
    %c0_7 = arith.constant 0 : index
    %21 = vector.load %arg1[%c0_6, %c0_7] : memref<16x2xf32, #tpu.memory_space<vmem>>, vector<16x2xf32>
    %22 = vector.extract_strided_slice %21 {offsets = [0, 0], sizes = [16, 1], strides = [1, 1]} : vector<16x2xf32> to vector<16x1xf32>
    %23 = vector.extract_strided_slice %21 {offsets = [0, 1], sizes = [16, 1], strides = [1, 1]} : vector<16x2xf32> to vector<16x1xf32>
    %24 = vector.broadcast %9 : vector<1x128xf32> to vector<16x128xf32>
    %25 = vector.broadcast %22 : vector<16x1xf32> to vector<16x128xf32>
    %26 = arith.cmpf ogt, %24, %25 : vector<16x128xf32>
    %27 = vector.broadcast %9 : vector<1x128xf32> to vector<16x128xf32>
    %28 = vector.broadcast %23 : vector<16x1xf32> to vector<16x128xf32>
    %29 = arith.cmpf ole, %27, %28 : vector<16x128xf32>
    %30 = arith.andi %26, %29 : vector<16x128xi1>
    %31 = arith.extui %30 : vector<16x128xi1> to vector<16x128xi32>
    %32 = arith.sitofp %31 : vector<16x128xi32> to vector<16x128xf32>
    %cst_8 = arith.constant dense<0.000000e+00> : vector<16xf32>
    %33 = vector.multi_reduction <add>, %32, %cst_8 [1] : vector<16x128xf32> to vector<16xf32>
    %34 = vector.shape_cast %33 : vector<16xf32> to vector<16x1xf32>
    %35 = vector.broadcast %9 : vector<1x128xf32> to vector<16x128xf32>
    %36 = arith.mulf %32, %35 : vector<16x128xf32>
    %cst_9 = arith.constant dense<0.000000e+00> : vector<16xf32>
    %37 = vector.multi_reduction <add>, %36, %cst_9 [1] : vector<16x128xf32> to vector<16xf32>
    %38 = vector.shape_cast %37 : vector<16xf32> to vector<16x1xf32>
    %39 = vector.broadcast %20 : vector<1x128xf32> to vector<16x128xf32>
    %40 = arith.mulf %32, %39 : vector<16x128xf32>
    %cst_10 = arith.constant dense<0.000000e+00> : vector<16xf32>
    %41 = vector.multi_reduction <add>, %40, %cst_10 [1] : vector<16x128xf32> to vector<16xf32>
    %42 = vector.shape_cast %41 : vector<16xf32> to vector<16x1xf32>
    %43 = tpu.iota {dimensions = array<i32: 1>} : vector<16x128xi32>
    %c0_i32 = arith.constant 0 : i32
    %44 = vector.broadcast %c0_i32 : i32 to vector<16x128xi32>
    %45 = arith.cmpi eq, %43, %44 : vector<16x128xi32>
    %c1_i32 = arith.constant 1 : i32
    %46 = vector.broadcast %c1_i32 : i32 to vector<16x128xi32>
    %47 = arith.cmpi eq, %43, %46 : vector<16x128xi32>
    %c2_i32 = arith.constant 2 : i32
    %48 = vector.broadcast %c2_i32 : i32 to vector<16x128xi32>
    %49 = arith.cmpi eq, %43, %48 : vector<16x128xi32>
    %cst_11 = arith.constant 0.000000e+00 : f32
    %50 = vector.shape_cast %42 : vector<16x1xf32> to vector<16x1xf32>
    %51 = vector.broadcast %50 : vector<16x1xf32> to vector<16x128xf32>
    %52 = vector.broadcast %cst_11 : f32 to vector<16x128xf32>
    %53 = arith.select %49, %51, %52 : vector<16x128xi1>, vector<16x128xf32>
    %54 = vector.shape_cast %38 : vector<16x1xf32> to vector<16x1xf32>
    %55 = vector.broadcast %54 : vector<16x1xf32> to vector<16x128xf32>
    %56 = arith.select %47, %55, %53 : vector<16x128xi1>, vector<16x128xf32>
    %57 = vector.shape_cast %34 : vector<16x1xf32> to vector<16x1xf32>
    %58 = vector.broadcast %57 : vector<16x1xf32> to vector<16x128xf32>
    %59 = arith.select %45, %58, %56 : vector<16x128xi1>, vector<16x128xf32>
    %60 = vector.shape_cast %59 : vector<16x128xf32> to vector<1x16x128xf32>
    %c0_12 = arith.constant 0 : index
    %c0_13 = arith.constant 0 : index
    %c0_14 = arith.constant 0 : index
    %61 = vector.load %arg4[%c0_12, %c0_13, %c0_14] : memref<1x16x128xf32, #tpu.memory_space<vmem>>, vector<1x16x128xf32>
    tpu.vector_store %arg4[%c0_12, %c0_13, %c0_14], %60 {strides = array<i32>} : memref<1x16x128xf32, #tpu.memory_space<vmem>>, vector<1x16x128xf32>,
    return
  }
  func.func @transform_0(%arg0: i32) -> (i32, i32) {
    %c0_i32 = arith.constant 0 : i32
    %c0_i32_0 = arith.constant 0 : i32
    %c0_i32_1 = arith.constant 0 : i32
    return %c0_i32, %c0_i32_0 : i32, i32
  }
  func.func @transform_1(%arg0: i32) -> (i32, i32) {
    %c0_i32 = arith.constant 0 : i32
    %c0_i32_0 = arith.constant 0 : i32
    return %c0_i32, %arg0 : i32, i32
  }
  func.func @transform_2(%arg0: i32) -> (i32, i32) {
    %c0_i32 = arith.constant 0 : i32
    %c0_i32_0 = arith.constant 0 : i32
    return %c0_i32, %arg0 : i32, i32
  }
  func.func @transform_3(%arg0: i32) -> (i32, i32, i32) {
    %c0_i32 = arith.constant 0 : i32
    %c0_i32_0 = arith.constant 0 : i32
    %c0_i32_1 = arith.constant 0 : i32
    return %arg0, %c0_i32, %c0_i32_0 : i32, i32, i32
  }
}

</mosaic_0001>

<bundles_post_ra>
// kernel: ece_loss.1
= control target key start
LH: loop header
LB: loop body
LE: loop exit
PB: predicated region body
PF: predicated region fallthrough
CT: control target
= control target key end

     0   :  { %s516_s12 = smov 0   ;;  %s518_s13 = smov 0   ;;  %s588_s0 = inlined_call_operand.vmem [shape: f32[16,2], index: 0, kind: input, shape index: {}]   ;;  %s589_s1 = inlined_call_operand.vmem [shape: f32[10,256], index: 1, kind: input, shape index: {}]   ;;  %s590_s2 = inlined_call_operand.vmem [shape: s32[1,256], index: 2, kind: input, shape index: {}]   ;;  %s591_s3 = inlined_call_operand.vmem [shape: f32[2,16,128], index: 3, kind: output, shape index: {}]  }
   0x1   :  { %s520_s14 = smov 0  }
   0x2 LB: > { %s417_s15 = sadd.s32 4294967295, %s491_s14   ;;  %s533_s16 = sadd.s32 1, %s491_s14   ;;  %s491_s14 = sphi %s520_s14, %s594_s14   ;;  %s487_s13 = sphi %s518_s13, %s593_s13   ;;  %s483_s12 = sphi %s516_s12, %s592_s12  }
   0x3   : > { %s38_s17 = ssub.s32 %s491_s14, %s533_s16  ;;  %s41_s18 = sadd.s32 1, %s487_s13 }
   0x4   : > { %p39_p0 = scmp.eq.s32.totalorder %s38_s17, 0  ;;  %p48_p1 = scmp.ne.s32.totalorder %s487_s13, %s483_s12 }
   0x5   : > { %p49_p2 = scmp.eq.s32.totalorder %s491_s14, 0  ;;  %p420_p4 = scmp.ge.s32.totalorder %s491_s14, 2 }
   0x6   : > { %s542_s19 = scalar_select %p39_p0, %s487_s13, %s41_s18  }
   0x7   : > { %p50_p3 = por %p49_p2, %p48_p1  ;;  %129 = sbr.rel (%p420_p4) target bundleno = 18 (0x12), region = 20 }
   0xc   : > { %132 = sbr.rel (!%p50_p3) target bundleno = 18 (0x12), region = 24  ;;  %s134_s20 = sand.u32 (%p50_p3), 1, %s487_s13  }
   0xd   : > { %s422_s21 = sshll.u32 (%p50_p3), %s491_s14, 3  ;;  %s421_s22 = sshll.u32 (%p50_p3), %s134_s20, 4 }
   0xe   : > { %s138_s25 = scalar_lea.vmem (%p50_p3), %s589_s1, %s422_s21  ;;  %s136_s26 = scalar_lea.vmem (%p50_p3), [#allocation2], %s421_s22 }
   0xf   : > { %v169_v0 = vld [vmem:[%s138_s25] sm:$0xff] (%p50_p3)  ;;  %v171_v1 = vld [vmem:[%s138_s25 + $0x10] sm:$0xff] (%p50_p3) }
  0x10   : > { %170 = vst [vmem:[%s136_s26] sm:$0xff] (%p50_p3), %v169_v0 }
  0x11   : > { %172 = vst [vmem:[%s136_s26 + $0x8] sm:$0xff] %v171_v1 }
  0x12 PF: > { %p423_p5 = scmp.ge.s32.totalorder %s491_s14, 1  ;;  %p183_p6 = scmp.lt.s32.totalorder %s491_s14, 3 }
  0x14   : > { %p184_p7 = pnand %p423_p5, %p183_p6 }
  0x15   : > { %s190_s4 = sand.u32 (!%p184_p7), 1, %s483_s12   ;;  %p216_p8 = scmp.lt.s32.totalorder (!%p184_p7), %s417_s15, 1 }
  0x16   : > { %187 = sbr.rel (%p184_p7) target bundleno = 291 (0x123), region = 66  ;;  %s424_s5 = sshll.u32 (!%p184_p7), %s190_s4, 4 }
  0x17   : > { %s192_s6 = scalar_lea.vmem (!%p184_p7), [#allocation2], %s424_s5 }
  0x1b   : > { %v287_v2 = vld [vmem:[%s588_s0] sm:$0xff]  ;;  %v493_v3 = vmov 1   ;;  %v494_v4 = vmov 0   ;;  %v288_v5 = vld [vmem:[%s588_s0 + $0x8] sm:$0xff]  ;;  %vm226_vm0 = vcmask 1041408   ;;  %v264_v25 = vlaneseq  ;;  %s596_s15 = smov (!%p216_p8, %s417_s15), 1 }
  0x1c   : > { %461 = vset.pattern.permute.xlu1 %v493_v3  ;;  %460 = vset.pattern.permute.xlu0 %v494_v4  ;;  %v225_v6 = vld [vmem:[%s192_s6 + $0x8] sm:$0x3]  ;;  %v224_v7 = vld [vmem:[%s192_s6] sm:$0xff]  ;;  %s218_s9 = scalar_lea.vmem %s590_s2, %s596_s15  ;;  %v495_v53 = vmov 0.0   ;;  %s432_s10 = sshll.u32 %s596_s15, 4 }
  0x1d   : > { %302 = vperm.xlu1 %461, %v287_v2   ;;  %291 = vperm.xlu0 %460, %v287_v2   ;;  %v227_v8 = vsel %vm226_vm0, %v225_v6, -inf  ;;  %v265_v26 = vshrl.u32 %v264_v25, 7  ;;  %v283_v50 = vld [vmem:[%s218_s9] sm:$0x1]  ;;  %v335_v4 = vand.u32 127, %v264_v25  ;;  %s223_s14 = scalar_lea.vmem %s591_s3, %s432_s10 }
  0x1e   : > { %v228_v9 = vmax.f32 %v224_v7, %v227_v8 }
  0x1f   : > { %v266_v28 = vadd.s32 8, %v265_v26 }
  0x20   : > { %v229_v10 = vrot.slane %v228_v9, 4 }
  0x22   : > { %v230_v11 = vmax.f32 %v228_v9, %v229_v10 }
  0x24   : > { %v231_v12 = vrot.slane %v230_v11, 2 }
  0x25   : > { %306 = vperm.xlu1 %461, %v288_v5   ;;  %296 = vperm.xlu0 %460, %v288_v5  }
  0x26   : > { %v232_v13 = vmax.f32 %v230_v11, %v231_v12 }
  0x28   : > { %v233_v14 = vrot.slane %v232_v13, 1 }
  0x2a   : > { %v234_v15 = vmax.f32 %v232_v13, %v233_v14 }
  0x2c   : > { %v236_v16 = vsub.f32 %v225_v6, %v234_v15  ;;  %v235_v17 = vsub.f32 %v224_v7, %v234_v15  ;;  %vm268_vm1 = vcmp.eq.f32.partialorder %v225_v6, %v234_v15  ;;  %vm267_vm2 = vcmp.eq.f32.partialorder %v224_v7, %v234_v15 }
  0x2d   : > { %462 = vset.pattern.permute.xlu0 %v493_v3  ;;  %v270_v29 = vsel %vm268_vm1, %v266_v28, 10  ;;  %v269_v31 = vsel %vm267_vm2, %v265_v26, 10  ;;  %vm338_vm2 = vcmp.eq.s32.totalorder %v335_v4, 2 }
  0x2e   : > { %v239_v18 = vmul.f32 1.442695, %v236_v16  ;;  %v237_v19 = vmul.f32 1.442695, %v235_v17  ;;  %v271_v32 = vsel %vm226_vm0, %v270_v29, 2147483647 }
  0x2f   : > { %vm272_vm3 = vcmp.lt.s32.totalorder %v269_v31, %v271_v32 }
  0x30   : > { %463 = vpow2.f32 %v239_v18  ;;  %v273_v34 = vsel %vm272_vm3, %v269_v31, %v271_v32  ;;  %vm337_vm3 = vcmp.eq.s32.totalorder %v335_v4, 1 }
  0x31   : > { %465 = vpow2.f32 %v237_v19  ;;  %v274_v36 = vrot.slane %v273_v34, 4 }
  0x33   : > { %vm275_vm4 = vcmp.lt.s32.totalorder %v273_v34, %v274_v36 }
  0x34   : > { %v276_v38 = vsel %vm275_vm4, %v273_v34, %v274_v36  ;;  %vm336_vm4 = vcmp.eq.s32.totalorder %v335_v4, 0 }
  0x35   : > { %v277_v39 = vrot.slane %v276_v38, 2 }
  0x36   : > { %v464_v20 = vpop.eup %463 }
  0x37   : > { %v466_v21 = vpop.eup %465  ;;  %v241_v22 = vsel %vm226_vm0, %v464_v20, 0.0  ;;  %vm278_vm5 = vcmp.lt.s32.totalorder %v276_v38, %v277_v39 }
  0x38   : > { %v242_v23 = vadd.f32 %v466_v21, %v241_v22  ;;  %v279_v42 = vsel %vm278_vm5, %v276_v38, %v277_v39 }
  0x39   : > { %v280_v44 = vrot.slane %v279_v42, 1 }
  0x3a   : > { %v243_v24 = vrot.slane %v242_v23, 4 }
  0x3b   : > { %vm281_vm6 = vcmp.lt.s32.totalorder %v279_v42, %v280_v44 }
  0x3c   : > { %v244_v27 = vadd.f32 %v243_v24, %v242_v23  ;;  %v282_v49 = vsel %vm281_vm6, %v279_v42, %v280_v44 }
  0x3d   : > { %vm284_vm10 = vcmp.eq.s32.totalorder %v282_v49, %v283_v50 }
  0x3e   : > { %v245_v30 = vrot.slane %v244_v27, 2  ;;  %v427_v54 = vsel %vm284_vm10, 1.0, %v495_v53 }
  0x3f   : > { %v327_v58 = vperm.slane %v427_v54, 0 }
  0x40   : > { %v246_v33 = vadd.f32 %v245_v30, %v244_v27 }
  0x42   : > { %v247_v35 = vrot.slane %v246_v33, 1 }
  0x44   : > { %v248_v37 = vadd.f32 %v247_v35, %v246_v33 }
  0x46   : > { %467 = vrcp.f32 %v248_v37  ;;  %vm254_vm7 = vweird.f32 %v248_v37  ;;  %v260_v46 = vand.u32 2147483648, %v248_v37  ;;  %v258_v48 = vand.u32 2147483647, %v248_v37 }
  0x48   : > { %v261_v51 = vor.u32 1.1754944e-38, %v260_v46  ;;  %vm259_vm11 = vcmp.eq.f32.partialorder %v258_v48, 8.507059e+37 }
  0x4c   : > { %v468_v40 = vpop.eup %467 }
  0x4d   : > { %v250_v41 = vmul.f32 %v468_v40, %v248_v37  ;;  %vm255_vm8 = vweird.f32 %v468_v40 }
  0x4e   : > { %vm256_vm9 = vmor %vm254_vm7, %vm255_vm8 }
  0x4f   : > { %v251_v43 = vsub.f32 1.0, %v250_v41 }
  0x51   : > { %v252_v45 = vmul.f32 %v468_v40, %v251_v43 }
  0x53   : > { %v253_v47 = vadd.f32 %v468_v40, %v252_v45 }
  0x55   : > { %v257_v52 = vsel %vm256_vm9, %v468_v40, %v253_v47 }
  0x56   : > { %v262_v55 = vsel %vm259_vm11, %v261_v51, %v257_v52 }
  0x8f   : > { %v303_v56 = vpop.permute.xlu1 %302  ;;  %v292_v57 = vpop.permute.xlu0 %291 }
  0x90   : > { %vm309_vm12 = vcmp.le.f32.partialorder %v262_v55, %v303_v56  ;;  %vm299_vm13 = vcmp.gt.f32.partialorder %v262_v55, %v292_v57 }
  0x91   : > { %vm311_vm14 = vmand %vm299_vm13, %vm309_vm12 }
  0x92   : > { %v428_v59 = vsel %vm311_vm14, 1.0, %v495_v53 }
  0x93   : > { %v328_v60 = vmul.f32 %v428_v59, %v327_v58  ;;  %v321_v61 = vmul.f32 %v428_v59, %v262_v55 }
  0x95   : > { %330 = vadd.xlane.f32.xlu2 %v328_v60  ;;  %323 = vadd.xlane.f32.xlu0 %v321_v61 }
  0x97   : > { %v307_v62 = vpop.permute.xlu1 %306  ;;  %v297_v63 = vpop.permute.xlu0 %296 }
  0x98   : > { %vm310_vm15 = vcmp.le.f32.partialorder %v262_v55, %v307_v62  ;;  %vm300_vm0 = vcmp.gt.f32.partialorder %v262_v55, %v297_v63 }
  0x99   : > { %vm312_vm1 = vmand %vm300_vm0, %vm310_vm15 }
  0x9a   : > { %v429_v0 = vsel %vm312_vm1, 1.0, %v495_v53 }
  0x9b   : > { %v322_v1 = vmul.f32 %v429_v0, %v262_v55  ;;  %v329_v2 = vmul.f32 %v429_v0, %v327_v58 }
  0x9d   : > { %325 = vadd.xlane.f32.xlu1 %v322_v1  ;;  %332 = vadd.xlane.f32.xlu2 %v329_v2 }
  0xa5   : > { %317 = vadd.xlane.f32.xlu2 %v428_v59 }
  0xad   : > { %319 = vadd.xlane.f32.xlu2 %v429_v0 }
 0x108   : > { %v331_v3 = vpop.xlane.xlu2 %330  ;;  %v324_v7 = vpop.xlane.xlu0 %323 }
 0x109   : > { %v339_v6 = vsel %vm338_vm2, %v331_v3, 0.0 }
 0x10a   : > { %v341_v8 = vsel %vm337_vm3, %v324_v7, %v339_v6 }
 0x110   : > { %v333_v5 = vpop.xlane.xlu2 %332  ;;  %v326_v11 = vpop.xlane.xlu1 %325 }
 0x111   : > { %v340_v12 = vsel %vm338_vm2, %v333_v5, 0.0 }
 0x112   : > { %v342_v13 = vsel %vm337_vm3, %v326_v11, %v340_v12 }
 0x118   : > { %v318_v9 = vpop.xlane.xlu2 %317 }
 0x119   : > { %v343_v10 = vsel %vm336_vm4, %v318_v9, %v341_v8 }
 0x11a   : > { %345 = vst [vmem:[%s223_s14] sm:$0xff] %v343_v10 }
 0x120   : > { %v320_v14 = vpop.xlane.xlu2 %319 }
 0x121   : > { %v344_v15 = vsel %vm336_vm4, %v320_v14, %v342_v13 }
 0x122   : > { %346 = vst [vmem:[%s223_s14 + $0x8] sm:$0xff] %v344_v15 }
 0x123 PF: > { %p10_p9 = scmp.ge.s32.totalorder %s533_s16, 4   ;;  %s592_s12 = smov %s487_s13 }
 0x124   : > { %s593_s13 = smov %s542_s19  ;;  %s594_s14 = smov %s533_s16 }
 0x125   :  { %12 = sbr.rel (!%p10_p9) target bundleno = 2 (0x2), region = 108 }

</bundles_post_ra>
